<compile_context>
chip_gen: v7x
topology: tpu7x:2x2x1
jax: 0.10.0
libtpu: 0.0.40
codegen_flags: <defaults>
</compile_context>

<pallas_src>
import functools

import jax
import jax.numpy as jnp
import numpy as np
from jax.experimental import pallas as pl
from jax.experimental.pallas import tpu as pltpu

LANE = 128


def _round_up(x, m):
    return ((x + m - 1) // m) * m


def _sublane(dtype):
    """Minimum sublane multiple for dense (unmasked) loads/stores of dtype."""
    return 16 if np.dtype(dtype).itemsize == 2 else 8


# ---------------------------------------------------------------------------
# Kernel: the whole M-model ensemble head collapsed into two MXU matmuls.
# ---------------------------------------------------------------------------
def _ensemble_head_kernel(feats_ref, w1_ref, w2_ref, out_ref):
    # h = relu([feats | 1 | 0pad] @ W1aug): hidden activations of all M
    # backbone heads concatenated on the lane axis, plus a constant-one
    # column (for the folded layer-2 bias) and zero padding up to 128 lanes.
    h = jnp.dot(feats_ref[...], w1_ref[...], preferred_element_type=jnp.float32)
    h = jnp.maximum(h, 0.0).astype(w2_ref.dtype)
    # out = h @ W2aug: per-model second layers block-stacked on K with the
    # ensemble weights pre-folded in, plus the folded bias row -> the weighted
    # sum over models happens inside this single matmul.  Output is lane-dense
    # (class dim padded to 128) so the store is an unmasked vst.
    out_ref[...] = jnp.dot(h, w2_ref[...], preferred_element_type=jnp.float32)


# ---------------------------------------------------------------------------
# One-time fusion of all M backbone heads into two padded, pre-cast matrices.
# Run ONCE at init / param-load time, not per forward call.
# ---------------------------------------------------------------------------
def prepare_fused_params(params, compute_dtype=jnp.bfloat16):
    """Returns (w1_aug, w2_aug) for multi_backbone_ensemble_forward.

    w1_aug: [c_p, kp] = concat_m(w1[m]) with b1 folded into a bias row and a
                        constant-one hidden column appended; rows padded to a
                        sublane multiple, columns padded to a multiple of 128.
    w2_aug: [kp, ncp] = block-stack_m(weights[m] * w2[m]) with the weighted b2
                        folded into the row hit by the constant-one hidden
                        column; class dim padded to 128 (lane dense).

    NOTE: biases and ensemble weights get quantized to `compute_dtype` inside
    the fused matrices (single rounding), a slightly different rounding order
    than the PyTorch AMP ensemble (f32 bias add, f32 logit scaling).  Pass
    compute_dtype=jnp.float32 if exactness matters.
    """
    weights = params["weights"]          # [M]
    w1 = params["w1"]                    # [M, C, hidden]
    b1 = params["b1"]                    # [M, 1, hidden]
    w2 = params["w2"]                    # [M, hidden, num_classes]
    b2 = params["b2"]                    # [M, 1, num_classes]

    M, C, hidden = w1.shape
    num_classes = w2.shape[-1]

    hcat = M * hidden                                   # concatenated hidden
    c_aug = C + 1                                       # features + ones col
    c_p = _round_up(c_aug, _sublane(compute_dtype))     # sublane-aligned K
    kp = _round_up(hcat + 1, LANE)                      # padded hidden (+1)
    ncp = _round_up(num_classes, LANE)                  # lane-dense classes

    # W1aug[c, m*hidden + j] = w1[m, c, j]
    # W1aug[C, m*hidden + j] = b1[m, 0, j]     (bias row, hit by ones column)
    # W1aug[C, hcat]         = 1.0             (emits constant-one hidden col)
    w1_cat = jnp.transpose(w1, (1, 0, 2)).reshape(C, hcat)
    b1_cat = b1[:, 0, :].reshape(hcat)
    w1_aug = jnp.zeros((c_p, kp), jnp.float32)
    w1_aug = w1_aug.at[:C, :hcat].set(w1_cat)
    w1_aug = w1_aug.at[C, :hcat].set(b1_cat)
    w1_aug = w1_aug.at[C, hcat].set(1.0)

    # W2aug[m*hidden + j, c] = weights[m] * w2[m, j, c]
    # W2aug[hcat, c]         = sum_m weights[m] * b2[m, 0, c]
    w2_cat = (weights[:, None, None] * w2).reshape(hcat, num_classes)
    b2_fold = jnp.sum(weights[:, None] * b2[:, 0, :], axis=0)
    w2_aug = jnp.zeros((kp, ncp), jnp.float32)
    w2_aug = w2_aug.at[:hcat, :num_classes].set(w2_cat)
    w2_aug = w2_aug.at[hcat, :num_classes].set(b2_fold)

    return w1_aug.astype(compute_dtype), w2_aug.astype(compute_dtype)


def multi_backbone_ensemble_forward(x_nchw, w1_aug, w2_aug, *, num_classes,
                                    max_batch_tile=256):
    """x_nchw: [B, C, H, W] float32.  Returns ensemble logits [B, num_classes].

    w1_aug / w2_aug come from prepare_fused_params (computed once, reused
    across calls).
    """
    B, C, H, W = x_nchw.shape
    c_p, kp = w1_aug.shape
    ncp = w2_aug.shape[-1]
    dtype = w1_aug.dtype
    sub = _sublane(dtype)
    itemsize = np.dtype(dtype).itemsize

    # ---- Global average pool hoisted out of the kernel (computed once) ----
    # Single contiguous last-axis reduction (lane-axis reduce for XLA).
    feats = jnp.mean(x_nchw.astype(jnp.float32).reshape(B, C, H * W), axis=-1)
    cols = [feats, jnp.ones((B, 1), jnp.float32)]
    if c_p > C + 1:                       # zero-pad K to the sublane multiple
        cols.append(jnp.zeros((B, c_p - (C + 1)), jnp.float32))
    feats_aug = jnp.concatenate(cols, axis=1)                      # [B, c_p]

    # ---- Batch tiling: sublane-aligned tb; >=2 tiles for large B (v7x) ----
    tb = min(max_batch_tile, _round_up(B, sub))
    if B >= 256:  # make the "parallel" axis actually shard across 2 TCs
        tb = min(tb, _round_up(-(-B // 2), sub))
    nb = pl.cdiv(B, tb)
    bp = nb * tb
    if bp != B:
        feats_aug = jnp.pad(feats_aug, ((0, bp - B), (0, 0)))
    feats_aug = feats_aug.astype(dtype)

    # ---- Explicit VMEM budget: double-buffered inputs + f32 out blocks ----
    block_bytes = (2 * (tb * c_p + c_p * kp + kp * ncp) * itemsize
                   + 2 * tb * ncp * 4)
    vmem_limit = min(64 * 1024 * 1024,                 # v7x physical ceiling
                     max(2 * block_bytes + (4 << 20), 16 * 1024 * 1024))

    cost = pl.CostEstimate(
        flops=2 * bp * c_p * kp + 2 * bp * kp * ncp,
        transcendentals=0,
        bytes_accessed=(bp * c_p + c_p * kp + kp * ncp) * itemsize
                       + bp * ncp * 4)

    out_padded = pl.pallas_call(
        _ensemble_head_kernel,
        out_shape=jax.ShapeDtypeStruct((bp, ncp), jnp.float32),
        grid_spec=pltpu.PrefetchScalarGridSpec(
            num_scalar_prefetch=0,
            grid=(nb,),
            in_specs=[
                pl.BlockSpec((tb, c_p), lambda i: (i, 0)),   # feats batch tile
                pl.BlockSpec((c_p, kp), lambda i: (0, 0)),   # fused layer-1 W
                pl.BlockSpec((kp, ncp), lambda i: (0, 0)),   # fused layer-2 W
            ],
            out_specs=pl.BlockSpec((tb, ncp), lambda i: (i, 0)),
        ),
        compiler_params=pltpu.CompilerParams(
            dimension_semantics=("parallel",),
            vmem_limit_bytes=vmem_limit,
        ),
        cost_estimate=cost,
    )(feats_aug, w1_aug, w2_aug)

    return out_padded[:B, :num_classes]


def _reference_forward(x_nchw, params):
    """Pure-JAX f32 reference mirroring the PyTorch ensemble semantics."""
    hi = jax.lax.Precision.HIGHEST
    feats = jnp.mean(x_nchw, axis=(2, 3))                                # [B, C]
    all_outputs = []
    for m in range(params["w1"].shape[0]):
        h = jnp.maximum(
            jnp.matmul(feats, params["w1"][m], precision=hi) + params["b1"][m][0],
            0.0)
        logits = jnp.matmul(h, params["w2"][m], precision=hi) + params["b2"][m][0]
        all_outputs.append(logits)
    stacked = jnp.stack(all_outputs)                                     # [M, B, nc]
    weighted = params["weights"][:, None, None] * stacked
    return weighted.sum(axis=0)


def init_params(key, num_models, in_channels, hidden, num_classes):
    ks = jax.random.split(key, 4)
    w1 = jax.random.normal(ks[0], (num_models, in_channels, hidden), jnp.float32) * 0.5
    b1 = jax.random.normal(ks[1], (num_models, 1, hidden), jnp.float32) * 0.05
    w2 = jax.random.normal(ks[2], (num_models, hidden, num_classes), jnp.float32) * 0.5
    b2 = jax.random.normal(ks[3], (num_models, 1, num_classes), jnp.float32) * 0.05
    # Default ensemble weights: uniform 1/M (matches torch.ones(M)/M).
    weights = jnp.ones((num_models,), jnp.float32) / num_models
    return {"weights": weights, "w1": w1, "b1": b1, "w2": w2, "b2": b2}


if __name__ == "__main__":
    # Small shapes consistent with the module's forward:
    #   x: [B=2, C=4, H=16, W=16], 3 ensemble members, num_classes=8, hidden=32
    B, C, H, W = 2, 4, 16, 16
    M, hidden, num_classes = 3, 32, 8

    key = jax.random.PRNGKey(0)
    k_x, k_p = jax.random.split(key)
    x = jax.random.normal(k_x, (B, C, H, W), jnp.float32)
    params = init_params(k_p, M, C, hidden, num_classes)

    ref = _reference_forward(x, params)

    fwd = jax.jit(multi_backbone_ensemble_forward,
                  static_argnames=("num_classes", "max_batch_tile"))

    # f32 fused-weight path: structural check.  Tolerance is mildly loosened
    # vs exact equality because the kernel matmul runs at default MXU
    # precision while the reference uses Precision.HIGHEST; scale atol with K
    # when validating at real backbone feature sizes.
    w1_f32, w2_f32 = prepare_fused_params(params, compute_dtype=jnp.float32)
    out_f32 = jax.block_until_ready(fwd(x, w1_f32, w2_f32, num_classes=num_classes))
    assert out_f32.shape == (B, num_classes)
    assert jnp.allclose(out_f32, ref, atol=1e-3, rtol=1e-3), "f32 mismatch vs reference"

    # bf16-operand / f32-accumulate path (the optimized default, AMP-style).
    w1_bf16, w2_bf16 = prepare_fused_params(params, compute_dtype=jnp.bfloat16)
    out = jax.block_until_ready(fwd(x, w1_bf16, w2_bf16, num_classes=num_classes))
    assert out.shape == (B, num_classes)
    assert jnp.allclose(out, ref, atol=1e-2, rtol=5e-2), "bf16 mismatch vs reference"

    print("KERNEL_OK")
</pallas_src>

<mosaic_0001>
module attributes {stable_mosaic.version = 11 : i64} {
  func.func @_ensemble_head_kernel(%arg0: i32, %arg1: memref<8x8xf32, #tpu.memory_space<vmem>>, %arg2: memref<8x128xf32, #tpu.memory_space<vmem>>, %arg3: memref<128x128xf32, #tpu.memory_space<vmem>>, %arg4: memref<8x128xf32, #tpu.memory_space<vmem>>) attributes {dimension_semantics = [#tpu.dimension_semantics<parallel>], iteration_bounds = array<i64: 1>, scalar_prefetch = 0 : i64, scratch_operands = 0 : i64, tpu.core_type = #tpu.core_type<tc>, window_params = [{transform_indices = @transform_0, window_bounds = array<i64: 8, 8>}, {pipeline_mode = #tpu.pipeline_mode<synchronous>, transform_indices = @transform_1, window_bounds = array<i64: 8, 128>}, {pipeline_mode = #tpu.pipeline_mode<synchronous>, transform_indices = @transform_2, window_bounds = array<i64: 128, 128>}, {transform_indices = @transform_3, window_bounds = array<i64: 8, 128>}]} {
    %c0 = arith.constant 0 : index
    %c0_0 = arith.constant 0 : index
    %0 = vector.load %arg1[%c0, %c0_0] : memref<8x8xf32, #tpu.memory_space<vmem>>, vector<8x8xf32>
    %c0_1 = arith.constant 0 : index
    %c0_2 = arith.constant 0 : index
    %1 = vector.load %arg2[%c0_1, %c0_2] : memref<8x128xf32, #tpu.memory_space<vmem>>, vector<8x128xf32>
    %cst = arith.constant dense<0.000000e+00> : vector<8x128xf32>
    %2 = tpu.matmul %0, %1, %cst {dimension_numbers = #tpu.dot_dimension_numbers<[1], [0], [0], [1], [0, 0, 1, 1], [], []>} : vector<8x8xf32>, vector<8x128xf32>, vector<8x128xf32> -> vector<8x128xf32>
    %cst_3 = arith.constant 0.000000e+00 : f32
    %3 = vector.broadcast %cst_3 : f32 to vector<8x128xf32>
    %4 = arith.maximumf %2, %3 : vector<8x128xf32>
    %c0_4 = arith.constant 0 : index
    %c0_5 = arith.constant 0 : index
    %5 = vector.load %arg3[%c0_4, %c0_5] : memref<128x128xf32, #tpu.memory_space<vmem>>, vector<128x128xf32>
    %cst_6 = arith.constant dense<0.000000e+00> : vector<8x128xf32>
    %6 = tpu.matmul %4, %5, %cst_6 {dimension_numbers = #tpu.dot_dimension_numbers<[1], [0], [0], [1], [0, 0, 1, 1], [], []>} : vector<8x128xf32>, vector<128x128xf32>, vector<8x128xf32> -> vector<8x128xf32>
    %c0_7 = arith.constant 0 : index
    %c0_8 = arith.constant 0 : index
    %7 = vector.load %arg4[%c0_7, %c0_8] : memref<8x128xf32, #tpu.memory_space<vmem>>, vector<8x128xf32>
    tpu.vector_store %arg4[%c0_7, %c0_8], %6 {strides = array<i32>} : memref<8x128xf32, #tpu.memory_space<vmem>>, vector<8x128xf32>,
    return
  }
  func.func @transform_0(%arg0: i32) -> (i32, i32) {
    %c0_i32 = arith.constant 0 : i32
    %c0_i32_0 = arith.constant 0 : i32
    return %arg0, %c0_i32 : i32, i32
  }
  func.func @transform_1(%arg0: i32) -> (i32, i32) {
    %c0_i32 = arith.constant 0 : i32
    %c0_i32_0 = arith.constant 0 : i32
    %c0_i32_1 = arith.constant 0 : i32
    return %c0_i32, %c0_i32_0 : i32, i32
  }
  func.func @transform_2(%arg0: i32) -> (i32, i32) {
    %c0_i32 = arith.constant 0 : i32
    %c0_i32_0 = arith.constant 0 : i32
    %c0_i32_1 = arith.constant 0 : i32
    return %c0_i32, %c0_i32_0 : i32, i32
  }
  func.func @transform_3(%arg0: i32) -> (i32, i32) {
    %c0_i32 = arith.constant 0 : i32
    %c0_i32_0 = arith.constant 0 : i32
    return %arg0, %c0_i32 : i32, i32
  }
}

</mosaic_0001>

<bundles_post_ra>
// kernel: multi_backbone_ensemble_forward.1
= control target key start
LH: loop header
LB: loop body
LE: loop exit
PB: predicated region body
PF: predicated region fallthrough
CT: control target
= control target key end

     0   :  { %vm16_vm0 = vcmask 64512   ;;  %v269_v0 = vmov 0.0   ;;  %vm270_vm1 = vmmov 0   ;;  %v271_v4 = vmov 0.0|0.0   ;;  %s349_s1 = inlined_call_operand.vmem [shape: f32[8,128], index: 1, kind: input, shape index: {}]   ;;  %s350_s0 = inlined_call_operand.vmem [shape: f32[8,8], index: 0, kind: input, shape index: {}]   ;;  %s351_s2 = inlined_call_operand.vmem [shape: f32[128,128], index: 2, kind: input, shape index: {}]   ;;  %s352_s3 = inlined_call_operand.vmem [shape: f32[8,128], index: 3, kind: output, shape index: {}]  }
   0x1   :  { %202 = vmatprep.subr.mxu0 %v269_v0  ;;  %v15_v1 = vld [vmem:[%s349_s1] sm:$0xff]  ;;  %204 = vmatprep.mubr.msk.f32.mxu0 %vm270_vm1, %v269_v0  ;;  %v92_v5 = vld [vmem:[%s351_s2 + $0x8] sm:$0xff]  ;;  %v93_v6 = vld [vmem:[%s351_s2 + $0x10] sm:$0xff] }
   0x2   :  { %v14_v2 = vld [vmem:[%s350_s0] sm:$0xff]  ;;  %203 = vmatpush3.msra.mxu0 %v15_v1  ;;  %242 = vmatprep.subr.bf16.mxu1 %v271_v4  ;;  %v94_v7 = vld [vmem:[%s351_s2 + $0x18] sm:$0xff]  ;;  %v96_v11 = vld [vmem:[%s351_s2 + $0x28] sm:$0xff] }
   0x3   :  { %v91_v3 = vld [vmem:[%s351_s2] sm:$0xff]  ;;  %205 = vmatmul.mubr.msk.f32.vlgmr.msra.gmra.mrb[0].mxu0 %vm16_vm0, %v14_v2  ;;  %239 = vmatprep.mubr.msk.f32.mxu1 %vm270_vm1, %v269_v0  ;;  %v246_v9 = vpack.c.bf16 %v94_v7, %v93_v6  ;;  %v97_v13 = vld [vmem:[%s351_s2 + $0x30] sm:$0xff]  ;;  %v98_v14 = vld [vmem:[%s351_s2 + $0x38] sm:$0xff] }
   0x4   :  { %v243_v8 = vpack.c.bf16 %v92_v5, %v91_v3  ;;  %v95_v10 = vld [vmem:[%s351_s2 + $0x20] sm:$0xff]  ;;  %v252_v15 = vpack.c.bf16 %v98_v14, %v97_v13  ;;  %v100_v17 = vld [vmem:[%s351_s2 + $0x48] sm:$0xff]  ;;  %v101_v19 = vld [vmem:[%s351_s2 + $0x50] sm:$0xff] }
   0x5   :  { %v249_v12 = vpack.c.bf16 %v96_v11, %v95_v10  ;;  %v99_v16 = vld [vmem:[%s351_s2 + $0x40] sm:$0xff]  ;;  %v102_v20 = vld [vmem:[%s351_s2 + $0x58] sm:$0xff]  ;;  %v104_v23 = vld [vmem:[%s351_s2 + $0x68] sm:$0xff] }
   0x6   :  { %244 = vmatpush3.bf16.msra.mxu1 %v243_v8  ;;  %v255_v18 = vpack.c.bf16 %v100_v17, %v99_v16  ;;  %v258_v21 = vpack.c.bf16 %v102_v20, %v101_v19  ;;  %v103_v22 = vld [vmem:[%s351_s2 + $0x60] sm:$0xff]  ;;  %v105_v25 = vld [vmem:[%s351_s2 + $0x70] sm:$0xff]  ;;  %v106_v26 = vld [vmem:[%s351_s2 + $0x78] sm:$0xff] }
   0x7   :  { %245 = vmatprep.subr.bf16.mxu1 %v271_v4  ;;  %v261_v24 = vpack.c.bf16 %v104_v23, %v103_v22  ;;  %v264_v27 = vpack.c.bf16 %v106_v26, %v105_v25 }
   0xa   :  { %247 = vmatpush3.bf16.msra.mxu1 %v246_v9 }
   0xb   :  { %248 = vmatprep.subr.bf16.mxu1 %v271_v4 }
   0xe   :  { %250 = vmatpush3.bf16.msra.mxu1 %v249_v12 }
   0xf   :  { %251 = vmatprep.subr.bf16.mxu1 %v271_v4 }
  0x12   :  { %253 = vmatpush3.bf16.msra.mxu1 %v252_v15 }
  0x13   :  { %254 = vmatprep.subr.bf16.mxu1 %v271_v4 }
  0x16   :  { %256 = vmatpush3.bf16.msra.mxu1 %v255_v18 }
  0x17   :  { %257 = vmatprep.subr.bf16.mxu1 %v271_v4 }
  0x1a   :  { %259 = vmatpush3.bf16.msra.mxu1 %v258_v21 }
  0x1b   :  { %260 = vmatprep.subr.bf16.mxu1 %v271_v4 }
  0x1e   :  { %262 = vmatpush3.bf16.msra.mxu1 %v261_v24 }
  0x1f   :  { %263 = vmatprep.subr.bf16.mxu1 %v271_v4 }
  0x22   :  { %265 = vmatpush3.bf16.msra.mxu1 %v264_v27 }
  0xd6   :  { %v86_v28 = vpop.f32.mrb[0].mxu0 }
  0xd7   :  { %v90_v29 = vmax.f32 %v86_v28, 0.0  ;;  %v206_v30 = vpop.f32.mrb[1].mxu0 }
  0xd9   :  { %240 = vmatmul.mubr.f32.vlgmr.msra.gmra.mrb[0].mxu1 %v90_v29 }
 0x1ac   :  { %v173_v31 = vpop.f32.mrb[0].mxu1 }
 0x1ad   :  { %177 = vst [vmem:[%s352_s3] sm:$0xff] %v173_v31  ;;  %v241_v32 = vpop.f32.mrb[1].mxu1 }

</bundles_post_ra>
